<compile_context>
chip_gen: v6e
topology: v6e:2x2x1
jax: 0.10.0
libtpu: 0.0.40
codegen_flags: <defaults>
</compile_context>

<pallas_src>
import jax
import jax.numpy as jnp
from jax import lax
from jax.experimental import pallas as pl
from jax.experimental.pallas import tpu as pltpu

_LANES = 128


def _round_up(x, m):
    return ((x + m - 1) // m) * m


def _num_tensorcores():
    """2 on v7x (2 TensorCores / chip), 1 elsewhere (v5e / v6e)."""
    try:
        kind = jax.devices()[0].device_kind.lower()
    except Exception:
        return 1
    if "v7" in kind or "7x" in kind:
        return 2
    return 1


def _make_kernel(threshold, margin_left, margin_right, *, blk, rows,
                 tiles_per_core, needs_mask):
    # Plain Python floats -> jaxpr literals (no captured array constants).
    thr = float(threshold)
    ml = float(margin_left)
    mr = float(margin_right)
    # sign(label - thr + 1e-6) >= 0  <=>  label >= thr - 1e-6  (one vsub saved)
    cmp_thr = thr - 1e-6
    right_c = thr + mr   # right branch:  (thr + mr) - pred
    left_c = thr - ml    # left  branch:  pred - (thr - ml)

    def kernel(pred_ref, label_ref, out_ref):
        c = pl.program_id(0)
        i = pl.program_id(1)

        @pl.when(i == 0)
        def _():
            out_ref[...] = jnp.zeros_like(out_ref)

        pred = pred_ref[...].astype(jnp.float32)
        label = label_ref[...].astype(jnp.float32)

        # Select the margin branch (same semantics as sign = d/|d| in the ref,
        # without the divide / 0-0 NaN edge case).
        ts = jnp.where(label >= cmp_thr, right_c - pred, pred - left_c)
        loss = jnp.maximum(ts, 0.0)

        if needs_mask:
            # Ragged last tile (and any clamped duplicate tile from the
            # per-core split): zero out rows past the true row count.
            tile = c * tiles_per_core + i
            row_idx = tile * blk + lax.broadcasted_iota(jnp.int32, loss.shape, 0)
            loss = jnp.where(row_idx < rows, loss, 0.0)

        # Fold blk rows into 8 sublanes with pure VPU adds (layout-preserving
        # reshape) and accumulate into the resident (8, 128) output block.
        out_ref[...] += loss.reshape(blk // 8, 8, _LANES).sum(axis=0)

    return kernel


def threshold_loss(pred, label, threshold=0.05, margin_left=0.03,
                   margin_right=0.03, block_rows=8192):
    assert pred.shape == label.shape
    total = pred.size

    # ---- layout: lane-dense (rows, 128); pad ONLY the sub-128 remainder ----
    rows = pl.cdiv(total, _LANES)
    pred_flat = pred.reshape(-1)
    label_flat = label.reshape(-1)
    rem = rows * _LANES - total          # < 128
    if rem:
        # Zero-loss padding values: label >= threshold picks the right branch,
        # huge pred makes ts negative -> relu -> 0. (f32/bf16/fp16 safe.)
        pred_flat = jnp.pad(pred_flat, (0, rem), constant_values=1e6)
        label_flat = jnp.pad(label_flat, (0, rem), constant_values=1.0)
    pred2d = pred_flat.reshape(rows, _LANES)     # free reshape when rem == 0
    label2d = label_flat.reshape(rows, _LANES)

    # ---- tiling ----
    blk = min(int(block_rows), _round_up(rows, 8))
    blk = max(8, _round_up(blk, 8))
    tiles_total = pl.cdiv(rows, blk)

    num_cores = min(_num_tensorcores(), tiles_total)
    tiles_per_core = pl.cdiv(tiles_total, num_cores)

    covered_rows = num_cores * tiles_per_core * blk
    needs_mask = covered_rows > rows
    needs_clamp = num_cores * tiles_per_core > tiles_total

    kernel = _make_kernel(threshold, margin_left, margin_right,
                          blk=blk, rows=rows,
                          tiles_per_core=tiles_per_core,
                          needs_mask=needs_mask)

    if needs_clamp:
        # Keep the DMA in-bounds for duplicate tiles; their contribution is
        # zeroed by the in-kernel row mask.
        def in_map(c, i):
            return (jnp.minimum(c * tiles_per_core + i, tiles_total - 1), 0)
    else:
        def in_map(c, i):
            return (c * tiles_per_core + i, 0)

    if num_cores > 1:
        dims = (pltpu.CORE_PARALLEL, pltpu.ARBITRARY)   # real 2-TC sharding (v7x)
    else:
        dims = (pltpu.ARBITRARY, pltpu.ARBITRARY)       # size-1 leading axis

    partials = pl.pallas_call(
        kernel,
        out_shape=jax.ShapeDtypeStruct((num_cores * 8, _LANES), jnp.float32),
        grid=(num_cores, tiles_per_core),
        in_specs=[
            pl.BlockSpec((blk, _LANES), in_map),
            pl.BlockSpec((blk, _LANES), in_map),
        ],
        out_specs=pl.BlockSpec((8, _LANES), lambda c, i: (c, 0)),
        compiler_params=pltpu.CompilerParams(
            dimension_semantics=dims,
            # 16 MiB of double-buffered f32 input tiles at blk=8192: raise
            # v5e's 16 MiB default scoped VMEM; == v6e/v7x default; well
            # under v7x's 64 MiB physical per-TC VMEM.
            vmem_limit_bytes=32 * 1024 * 1024),
    )(pred2d, label2d)

    # Final (8*num_cores, 128) reduce + mean over the TRUE element count.
    return jnp.sum(partials) / jnp.float32(total)


def threshold_loss_ref(pred, label, threshold=0.05, margin_left=0.03,
                       margin_right=0.03):
    d = label - threshold + 1e-6
    sign = d / jnp.abs(d)
    ts = (0.5 - 0.5 * sign) * (pred - threshold + margin_left) \
       + (0.5 + 0.5 * sign) * (threshold - pred + margin_right)
    return jnp.mean(jax.nn.relu(ts))


if __name__ == "__main__":
    key = jax.random.PRNGKey(0)
    kp, kl = jax.random.split(key)

    # Small NCHW-like inputs: batch=2, channels=4, spatial=16x16
    pred = jax.random.uniform(kp, (2, 4, 16, 16), dtype=jnp.float32)
    label = jax.random.uniform(kl, (2, 4, 16, 16), dtype=jnp.float32)

    out = threshold_loss(pred, label)
    out = jax.block_until_ready(out)

    ref = threshold_loss_ref(pred, label)
    assert jnp.allclose(out, ref, atol=1e-5, rtol=1e-5), (out, ref)

    # Ragged / non-divisible shape exercise (odd row-tile count + tail mask).
    pred2 = jax.random.uniform(kp, (3, 5, 7, 11), dtype=jnp.float32)
    label2 = jax.random.uniform(kl, (3, 5, 7, 11), dtype=jnp.float32)
    out2 = jax.block_until_ready(threshold_loss(pred2, label2, block_rows=8))
    ref2 = threshold_loss_ref(pred2, label2)
    assert jnp.allclose(out2, ref2, atol=1e-5, rtol=1e-5), (out2, ref2)

    print("KERNEL_OK")
</pallas_src>

<mosaic_0001>
module attributes {stable_mosaic.version = 11 : i64} {
  func.func @kernel(%arg0: i32, %arg1: i32, %arg2: memref<16x128xf32, #tpu.memory_space<vmem>>, %arg3: memref<16x128xf32, #tpu.memory_space<vmem>>, %arg4: memref<8x128xf32, #tpu.memory_space<vmem>>) attributes {dimension_semantics = [#tpu.dimension_semantics<arbitrary>, #tpu.dimension_semantics<arbitrary>], iteration_bounds = array<i64: 1, 1>, scalar_prefetch = 0 : i64, scratch_operands = 0 : i64, tpu.core_type = #tpu.core_type<tc>, window_params = [{transform_indices = @transform_0, window_bounds = array<i64: 16, 128>}, {transform_indices = @transform_1, window_bounds = array<i64: 16, 128>}, {transform_indices = @transform_2, window_bounds = array<i64: 8, 128>}]} {
    %c0_i32 = arith.constant 0 : i32
    %0 = arith.cmpi eq, %arg1, %c0_i32 : i32
    %1 = arith.extui %0 : i1 to i32
    %c0_i32_0 = arith.constant 0 : i32
    %2 = arith.cmpi ne, %1, %c0_i32_0 : i32
    scf.if %2 {
      %cst_12 = arith.constant 0.000000e+00 : f32
      %19 = vector.broadcast %cst_12 : f32 to vector<8x128xf32>
      %c0_13 = arith.constant 0 : index
      %c0_14 = arith.constant 0 : index
      %20 = vector.load %arg4[%c0_13, %c0_14] : memref<8x128xf32, #tpu.memory_space<vmem>>, vector<8x128xf32>
      tpu.vector_store %arg4[%c0_13, %c0_14], %19 {strides = array<i32>} : memref<8x128xf32, #tpu.memory_space<vmem>>, vector<8x128xf32>,
    } else {
    }
    %c0 = arith.constant 0 : index
    %c0_1 = arith.constant 0 : index
    %3 = vector.load %arg2[%c0, %c0_1] : memref<16x128xf32, #tpu.memory_space<vmem>>, vector<16x128xf32>
    %c0_2 = arith.constant 0 : index
    %c0_3 = arith.constant 0 : index
    %4 = vector.load %arg3[%c0_2, %c0_3] : memref<16x128xf32, #tpu.memory_space<vmem>>, vector<16x128xf32>
    %cst = arith.constant 4.999900e-02 : f32
    %5 = vector.broadcast %cst : f32 to vector<16x128xf32>
    %6 = arith.cmpf oge, %4, %5 : vector<16x128xf32>
    %cst_4 = arith.constant 8.000000e-02 : f32
    %7 = vector.broadcast %cst_4 : f32 to vector<16x128xf32>
    %8 = arith.subf %7, %3 : vector<16x128xf32>
    %cst_5 = arith.constant 2.000000e-02 : f32
    %9 = vector.broadcast %cst_5 : f32 to vector<16x128xf32>
    %10 = arith.subf %3, %9 : vector<16x128xf32>
    %11 = arith.select %6, %8, %10 : vector<16x128xi1>, vector<16x128xf32>
    %cst_6 = arith.constant 0.000000e+00 : f32
    %12 = vector.broadcast %cst_6 : f32 to vector<16x128xf32>
    %13 = arith.maximumf %11, %12 : vector<16x128xf32>
    %c0_7 = arith.constant 0 : index
    %c0_8 = arith.constant 0 : index
    %14 = vector.load %arg4[%c0_7, %c0_8] : memref<8x128xf32, #tpu.memory_space<vmem>>, vector<8x128xf32>
    %15 = vector.shape_cast %13 : vector<16x128xf32> to vector<2x8x128xf32>
    %cst_9 = arith.constant dense<0.000000e+00> : vector<8x128xf32>
    %16 = vector.multi_reduction <add>, %15, %cst_9 [0] : vector<2x8x128xf32> to vector<8x128xf32>
    %17 = arith.addf %14, %16 : vector<8x128xf32>
    %c0_10 = arith.constant 0 : index
    %c0_11 = arith.constant 0 : index
    %18 = vector.load %arg4[%c0_10, %c0_11] : memref<8x128xf32, #tpu.memory_space<vmem>>, vector<8x128xf32>
    tpu.vector_store %arg4[%c0_10, %c0_11], %17 {strides = array<i32>} : memref<8x128xf32, #tpu.memory_space<vmem>>, vector<8x128xf32>,
    return
  }
  func.func @transform_0(%arg0: i32, %arg1: i32) -> (i32, i32) {
    %c1_i32 = arith.constant 1 : i32
    %0 = arith.muli %arg0, %c1_i32 : i32
    %1 = arith.addi %0, %arg1 : i32
    %c0_i32 = arith.constant 0 : i32
    %c0_i32_0 = arith.constant 0 : i32
    return %1, %c0_i32 : i32, i32
  }
  func.func @transform_1(%arg0: i32, %arg1: i32) -> (i32, i32) {
    %c1_i32 = arith.constant 1 : i32
    %0 = arith.muli %arg0, %c1_i32 : i32
    %1 = arith.addi %0, %arg1 : i32
    %c0_i32 = arith.constant 0 : i32
    %c0_i32_0 = arith.constant 0 : i32
    return %1, %c0_i32 : i32, i32
  }
  func.func @transform_2(%arg0: i32, %arg1: i32) -> (i32, i32) {
    %c0_i32 = arith.constant 0 : i32
    %c0_i32_0 = arith.constant 0 : i32
    return %arg0, %c0_i32 : i32, i32
  }
}

</mosaic_0001>

<bundles_post_ra>
// kernel: tpu_custom_call.1
= control target key start
LH: loop header
LB: loop body
LE: loop exit
PB: predicated region body
PF: predicated region fallthrough
CT: control target
= control target key end

     0   :  { %7 = vsyncpa [#allocation3], 0  ;;  %s194_s0 = inlined_call_operand.hbm [shape: f32[16,128], index: 0, kind: input, shape index: {}]   ;;  %s195_s1 = inlined_call_operand.hbm [shape: f32[16,128], index: 1, kind: input, shape index: {}]   ;;  %s196_s2 = inlined_call_operand.hbm [shape: f32[8,128], index: 2, kind: output, shape index: {}]  }
   0x1   :  { %8 = vsyncpa [#allocation6], 0 }
   0x2   :  { %9 = vsyncpa [#allocation4], 0  ;;  %s165_s9 = smov [#allocation2]  }
   0x3   :  { %s19_s10 = sshll.u32 %s165_s9, 4  ;;  %s20_s10 = int_to_ptr.vmem [resolvable:$true] %s19_s10 }
   0x4   :  { %s107_s11 = scalar_lea.vmem %s20_s10, 256  ;;  %p112_p1 = scmp.lt.s32.totalorder %s20_s10, %s20_s10 }
   0x5   :  { %p108_p0 = scmp.ne.s32.totalorder %s20_s10, %s107_s11  ;;  %p113_p2 = scmp.lt.s32.totalorder %s107_s11, %s107_s11 }
   0x7   :  { %p114_p3 = por %p113_p2, %p112_p1 }
   0x9   :  { %p115_p4 = pnand %p114_p3, %p108_p0 }
   0xb   :  { %118 = shalt.err (!%p115_p4)
}
   0xc   :  { %s166_s12 = smov 128   ;;  %s167_s13 = smov 8  }
   0xd   :  { %25 = dma.hbm_to_vmem [thread:$0]  %s194_s0, 256, %s20_s10, [#allocation3], %s166_s12, %s166_s12, %s167_s13  }
   0xe   :  { %s168_s16 = smov [#allocation5]  }
   0xf   :  { %s35_s17 = sshll.u32 %s168_s16, 4  ;;  %s36_s17 = int_to_ptr.vmem [resolvable:$true] %s35_s17 }
  0x10   :  { %s127_s18 = scalar_lea.vmem %s36_s17, 256  ;;  %p132_p6 = scmp.lt.s32.totalorder %s36_s17, %s36_s17 }
  0x11   :  { %p128_p5 = scmp.ne.s32.totalorder %s36_s17, %s127_s18  ;;  %p133_p7 = scmp.lt.s32.totalorder %s127_s18, %s127_s18 }
  0x13   :  { %p134_p8 = por %p133_p7, %p132_p6 }
  0x15   :  { %p135_p9 = pnand %p134_p8, %p128_p5 }
  0x17   :  { %138 = shalt.err (!%p135_p9)
}
  0x18   :  { %41 = dma.hbm_to_vmem [thread:$0]  %s195_s1, 256, %s36_s17, [#allocation6], %s166_s12, %s166_s12, %s167_s13  }
  0x19   :  { %159 = dma.done.wait [#allocation3], 256  }
  0x1a   :  { %160 = vsyncadd [#allocation3], 4294967040 }
  0x1b   :  { %161 = dma.done.wait [#allocation6], 256  }
  0x1c   :  { %162 = vsyncadd [#allocation6], 4294967040  ;;  %v57_v0 = vld [vmem:[#allocation2] sm:$0xff]  ;;  %v58_v1 = vld [vmem:[#allocation2 + $0x8] sm:$0xff]  ;;  %s169_s0 = smov [#allocation7]  }
  0x1d   :  { %v59_v2 = vld [vmem:[#allocation5] sm:$0xff]  ;;  %v60_v3 = vld [vmem:[#allocation5 + $0x8] sm:$0xff]  ;;  %v63_v4 = vsub.f32 0.08, %v57_v0  ;;  %v64_v5 = vsub.f32 0.08, %v58_v1 }
  0x1e   :  { %vm61_vm0 = vcmp.ge.f32.partialorder %v59_v2, 0.049999  ;;  %vm62_vm1 = vcmp.ge.f32.partialorder %v60_v3, 0.049999  ;;  %v91_v6 = vadd.f32 -0.02, %v57_v0 }
  0x1f   :  { %v92_v7 = vadd.f32 -0.02, %v58_v1  ;;  %s81_s1 = sshll.u32 %s169_s0, 4  ;;  %s82_s1 = int_to_ptr.vmem [resolvable:$true] %s81_s1 }
  0x20   :  { %v67_v8 = vsel %vm61_vm0, %v63_v4, %v91_v6  ;;  %s139_s21 = scalar_lea.vmem %s82_s1, 128  ;;  %p144_p11 = scmp.lt.s32.totalorder %s82_s1, %s82_s1 }
  0x21   :  { %v68_v9 = vsel %vm62_vm1, %v64_v5, %v92_v7  ;;  %v69_v10 = vmax.f32 %v67_v8, 0.0  ;;  %p140_p10 = scmp.ne.s32.totalorder %s82_s1, %s139_s21  ;;  %p145_p12 = scmp.lt.s32.totalorder %s139_s21, %s139_s21 }
  0x22   :  { %v70_v11 = vmax.f32 %v68_v9, 0.0 }
  0x23   :  { %p146_p13 = por %p145_p12, %p144_p11 }
  0x24   :  { %v72_v12 = vadd.f32 %v70_v11, %v69_v10 }
  0x25   :  { %p147_p0 = pnand %p146_p13, %p140_p10 }
  0x26   :  { %74 = vst [vmem:[#allocation7] sm:$0xff] %v72_v12 }
  0x27   :  { %150 = shalt.err (!%p147_p0)
}
  0x28   :  { %84 = dma.vmem_to_hbm [thread:$0]  %s82_s1, 128, %s196_s2, [#allocation4]  }
  0x29   :  { %163 = dma.done.wait [#allocation4], 128  }
  0x2a   :  { %164 = vsyncadd [#allocation4], 4294967168 }
  0x2b   :  { %88 = vsyncpa [#allocation3], 1 }
  0x2c   :  { %89 = vsyncpa [#allocation6], 1 }
  0x2d   :  { %90 = vsyncpa [#allocation4], 1 }

</bundles_post_ra>
